<compile_context>
chip_gen: v7x
topology: tpu7x:2x2x1
jax: 0.10.0
libtpu: 0.0.40
codegen_flags: <defaults>
</compile_context>

<pallas_src>
import jax
import jax.numpy as jnp
from jax.experimental import pallas as pl
from jax.experimental.pallas import tpu as pltpu


def _dma_copy_kernel(x_hbm_ref, o_hbm_ref, sem):
    # Lambda(view) has no arithmetic: the only "work" in the materialize path is a
    # single whole-array HBM->HBM DMA.  The NCHW reinterpretation itself is a free
    # metadata reshape done in the wrapper.
    cp = pltpu.make_async_copy(x_hbm_ref, o_hbm_ref, sem)
    cp.start()
    cp.wait()


def _pallas_materialized_copy(x):
    """Materialize a copy of `x` via one HBM->HBM DMA (no VMEM round-trip, no grid)."""
    return pl.pallas_call(
        _dma_copy_kernel,
        out_shape=jax.ShapeDtypeStruct(x.shape, x.dtype),
        in_specs=[pl.BlockSpec(memory_space=pl.ANY)],
        out_specs=pl.BlockSpec(memory_space=pl.ANY),
        scratch_shapes=[pltpu.SemaphoreType.DMA(())],
    )(x)


def lambda_forward(x_flat, *, materialize_with_pallas=False):
    """Pallas/JAX implementation of Lambda(lambda x: x.view(-1, 1, 28, 28)).

    x_flat: (B, 784) array (any dtype)
    returns: (B, 1, 28, 28) array (NCHW, identical row-major values to torch .view)

    Default path is metadata-only (zero HBM traffic) — the correct translation of a
    pure view.  Set materialize_with_pallas=True only when a materialized copy must
    live inside a Pallas pipeline; for small MNIST batches (~200 KiB) the reshape is
    always faster than any kernel launch.
    """
    B, F = x_flat.shape
    assert F == 28 * 28, "mnist.py preprocess expects 784 features per row"

    if not materialize_with_pallas:
        # Recommended: .view() is metadata-only; so is jnp.reshape.
        return x_flat.reshape(-1, 1, 28, 28)

    copied = _pallas_materialized_copy(x_flat)
    return copied.reshape(-1, 1, 28, 28)


if __name__ == "__main__":
    key = jax.random.PRNGKey(0)

    # Primary case: the MNIST tutorial's batch size, B=64.
    B = 64
    x = jax.random.normal(key, (B, 28 * 28), dtype=jnp.float32)

    # 1) Default (metadata-only) path.
    y_fast = jax.block_until_ready(lambda_forward(x))
    assert y_fast.shape == (B, 1, 28, 28) and y_fast.dtype == jnp.float32
    assert bool(jnp.allclose(y_fast.reshape(B, -1), x))

    # 2) Pallas materialized-copy path (single HBM->HBM DMA, no padding, no VMEM).
    y_pallas = jax.block_until_ready(lambda_forward(x, materialize_with_pallas=True))
    assert y_pallas.shape == (B, 1, 28, 28) and y_pallas.dtype == jnp.float32
    assert bool(jnp.allclose(y_pallas.reshape(B, -1), x)), "Lambda(view) mismatch (pallas)"

    # 3) Small / "awkward" batch (B=2): previously exercised the padding path; now the
    #    DMA copies the natural shape directly with no extra HBM passes.
    x_small = jax.random.normal(jax.random.PRNGKey(1), (2, 28 * 28), dtype=jnp.float32)
    y_small = jax.block_until_ready(lambda_forward(x_small, materialize_with_pallas=True))
    assert y_small.shape == (2, 1, 28, 28)
    assert bool(jnp.allclose(y_small.reshape(2, -1), x_small)), "small-batch mismatch"

    # 4) Non-f32 dtype now also works through the DMA path (no (8,128) constraints).
    x_bf16 = x.astype(jnp.bfloat16)
    y_bf16 = jax.block_until_ready(lambda_forward(x_bf16, materialize_with_pallas=True))
    assert y_bf16.dtype == jnp.bfloat16 and y_bf16.shape == (B, 1, 28, 28)
    assert bool(jnp.all(y_bf16.reshape(B, -1) == x_bf16)), "bf16 DMA copy mismatch"

    print("KERNEL_OK")
</pallas_src>

<mosaic_0001>
module attributes {stable_mosaic.version = 11 : i64} {
  func.func @_dma_copy_kernel(%arg0: memref<64x784xf32, #tpu.memory_space<any>>, %arg1: memref<64x784xf32, #tpu.memory_space<any>>, %arg2: memref<!tpu.dma_semaphore, #tpu.memory_space<semaphore_mem>>) attributes {dimension_semantics = [], scalar_prefetch = 0 : i64, scratch_operands = 1 : i64, tpu.core_type = #tpu.core_type<tc>} {
    tpu.enqueue_dma source(%arg0 : memref<64x784xf32, #tpu.memory_space<any>>) target(%arg1 : memref<64x784xf32, #tpu.memory_space<any>>) target_semaphore(%arg2 : memref<!tpu.dma_semaphore, #tpu.memory_space<semaphore_mem>>)
    tpu.wait_dma2 semaphore(%arg2 : memref<!tpu.dma_semaphore, #tpu.memory_space<semaphore_mem>>) src(%arg0 : memref<64x784xf32, #tpu.memory_space<any>>) dst(%arg1 : memref<64x784xf32, #tpu.memory_space<any>>)
    return
  }
}

</mosaic_0001>

<bundles_post_ra>
// kernel: tpu_custom_call.1
= control target key start
LH: loop header
LB: loop body
LE: loop exit
PB: predicated region body
PF: predicated region fallthrough
CT: control target
= control target key end

     0   :  { %s35_s6 = smov [#allocation2]   ;;  %s36_s7 = smov [#allocation3]   ;;  %s54_s0 = inlined_call_operand.hbm [shape: f32[64,784], index: 0, kind: input, shape index: {}]   ;;  %s55_s1 = inlined_call_operand.hbm [shape: f32[64,784], index: 1, kind: output, shape index: {}]  }
   0x1   :  { %s37_s8 = smov 0  }
   0x2   :  { %18 = dma.general %s54_s0, 7168, %s55_s1, %s35_s6, %s36_s7, [#allocation4], %s37_s8, 0  }
   0x3   :  { %33 = dma.done.wait [#allocation2], 7168 }
   0x4   :  { %34 = vsyncadd [#allocation2], 4294960128 }
   0x5   :  { %23 = vsyncmov [#allocation2] }
   0x8   :  { %s24_s13 = vpop.sfrf %23 }
   0x9   :  { %p29_p0 = scmp.ne.s32.totalorder %s24_s13, 0 }
   0xb   :  { %28 = shalt.err (%p29_p0)  }

</bundles_post_ra>
